<compile_context>
chip_gen: v7x
topology: tpu7x:2x2x1
jax: 0.10.0
libtpu: 0.0.40
codegen_flags: <defaults>
</compile_context>

<pallas_src>
import jax
import jax.numpy as jnp
import numpy as np
from jax.experimental import pallas as pl
from jax.experimental.pallas import tpu as pltpu


def _fusion_kernel(x0_ref, x1_ref, w2af0_ref, w2af1_ref, wof0_ref, wof1_ref,
                   w1_ref, b1_ref, b2a_ref, w2b_ref, b2b_ref, bo0_ref, bo1_ref,
                   out0_ref, out1_ref):
    f32 = jnp.float32
    bf16 = jnp.bfloat16

    x0 = x0_ref[0]                      # (in_dim, T) bf16 -- HW tile on lanes
    x1 = x1_ref[0]
    w1 = w1_ref[...]                    # (hid1, in_dim) bf16
    b1 = b1_ref[...]                    # (hid1, 1) f32

    # conv_layer1 (1x1 conv + folded BN + ReLU), shared across the two views.
    # bf16 dot, f32 accumulate, f32 bias+ReLU, cast back to bf16 for next dot.
    h0 = jnp.maximum(jnp.dot(w1, x0, preferred_element_type=f32) + b1,
                     0.0).astype(bf16)
    h1 = jnp.maximum(jnp.dot(w1, x1, preferred_element_type=f32) + b1,
                     0.0).astype(bf16)

    # conv_layer2 first conv with the FTL(inverse) folded in: the channel
    # concat is replaced by two accumulating dots with per-batch folded mats.
    f = jnp.maximum(
        jnp.dot(w2af0_ref[0], h0, preferred_element_type=f32)
        + jnp.dot(w2af1_ref[0], h1, preferred_element_type=f32)
        + b2a_ref[...], 0.0).astype(bf16)
    # conv_layer2 second conv.
    f = jnp.maximum(jnp.dot(w2b_ref[...], f, preferred_element_type=f32)
                    + b2b_ref[...], 0.0).astype(bf16)

    # out_layer per view, with FTL(forward) folded into the conv weight.
    out0_ref[0] = jnp.maximum(
        jnp.dot(wof0_ref[0], f, preferred_element_type=f32) + bo0_ref[...],
        0.0).astype(out0_ref.dtype)
    out1_ref[0] = jnp.maximum(
        jnp.dot(wof1_ref[0], f, preferred_element_type=f32) + bo1_ref[...],
        0.0).astype(out1_ref.dtype)


def _pick_hw_tile(HW_pad, B, cap=2048, min_total_steps=8):
    """Largest 128-multiple divisor of HW_pad <= cap that still gives the
    (B, n_tiles) grid at least `min_total_steps` steps (so the v7x megacore
    gets >= ~4 steps per core); otherwise the smallest divisor (max steps)."""
    cands = [t for t in range(128, min(HW_pad, cap) + 1, 128) if HW_pad % t == 0]
    if not cands:
        return HW_pad
    for t in sorted(cands, reverse=True):
        if B * (HW_pad // t) >= min_total_steps:
            return t
    return cands[0]


def canonical_fusion_forward(xs, proj_list, proj_inv_list, params, H, W):
    """xs: list of 2 NCHW f32 tensors. Returns list of 2 NCHW f32 tensors."""
    x0, x1 = xs
    proj0, proj1 = proj_list
    pinv0, pinv1 = proj_inv_list
    (w1, b1, w2a, b2a, w2b, b2b, wo0, bo0, wo1, bo1) = params

    B, in_dim = x0.shape[0], x0.shape[1]
    HW = H * W
    hid1 = w1.shape[0]
    hid2 = w2b.shape[0]
    out_dim = wo0.shape[0]

    f32, bf16 = jnp.float32, jnp.bfloat16

    # NCHW -> (B, C, HW) is a free reshape; pad HW to a 128 multiple so all
    # stores are lane-dense (trimmed after the kernel).
    HW_pad = ((HW + 127) // 128) * 128
    x0b = x0.reshape(B, in_dim, HW)
    x1b = x1.reshape(B, in_dim, HW)
    if HW_pad != HW:
        pad = ((0, 0), (0, 0), (0, HW_pad - HW))
        x0b = jnp.pad(x0b, pad)
        x1b = jnp.pad(x1b, pad)
    x0b = x0b.astype(bf16)
    x1b = x1b.astype(bf16)

    # --- Algebraic folding (exact: no nonlinearity between FTL and conv) ---
    # conv2a input is concat([pinv0@h0, pinv1@h1]); split w2a by Cin halves and
    # fold each half with its per-batch inverse projection.
    w2a_l = w2a[:, :hid2]                                   # (hid2, hid2)
    w2a_r = w2a[:, hid2:]
    w2af0 = jnp.einsum('mk,bkn->bmn', w2a_l, pinv0)         # (B, hid2, hid1)
    w2af1 = jnp.einsum('mk,bkn->bmn', w2a_r, pinv1)
    # out_layer(ftl(f, proj)) == (wo @ proj[b]) @ f + bo
    wof0 = jnp.einsum('ok,bkn->bon', wo0, proj0)            # (B, out_dim, hid2)
    wof1 = jnp.einsum('ok,bkn->bon', wo1, proj1)

    # bf16 weights, f32 biases.
    w1_b, w2b_b = w1.astype(bf16), w2b.astype(bf16)
    w2af0, w2af1 = w2af0.astype(bf16), w2af1.astype(bf16)
    wof0, wof1 = wof0.astype(bf16), wof1.astype(bf16)

    T = _pick_hw_tile(HW_pad, B)
    n_tiles = HW_pad // T

    def full2d(a):
        return pl.BlockSpec(a.shape, lambda b, t: (0, 0))

    # Inputs / outputs tile along (batch, spatial); per-batch folded weights
    # move only when b changes (tile axis is the last grid axis on purpose).
    in_specs = [
        pl.BlockSpec((1, in_dim, T), lambda b, t: (b, 0, t)),       # x0
        pl.BlockSpec((1, in_dim, T), lambda b, t: (b, 0, t)),       # x1
        pl.BlockSpec((1, hid2, hid1), lambda b, t: (b, 0, 0)),      # w2af0
        pl.BlockSpec((1, hid2, hid1), lambda b, t: (b, 0, 0)),      # w2af1
        pl.BlockSpec((1, out_dim, hid2), lambda b, t: (b, 0, 0)),   # wof0
        pl.BlockSpec((1, out_dim, hid2), lambda b, t: (b, 0, 0)),   # wof1
        full2d(w1_b), full2d(b1),
        full2d(b2a), full2d(w2b_b), full2d(b2b),
        full2d(bo0), full2d(bo1),
    ]
    out_specs = [
        pl.BlockSpec((1, out_dim, T), lambda b, t: (b, 0, t)),
        pl.BlockSpec((1, out_dim, T), lambda b, t: (b, 0, t)),
    ]
    out_shape = [
        jax.ShapeDtypeStruct((B, out_dim, HW_pad), f32),
        jax.ShapeDtypeStruct((B, out_dim, HW_pad), f32),
    ]

    # VMEM budget: double-buffered input/output tiles + weights, with margin,
    # clamped well below the v7x 64 MiB physical per-TC VMEM.
    need = 2 * (2 * in_dim * T * 2                 # two bf16 input views
                + 2 * out_dim * T * 4              # two f32 output views
                + 2 * (hid2 * hid1 + out_dim * hid2) * 2   # per-batch weights
                + (hid1 * in_dim + hid2 * hid2) * 2        # global weights
                + (hid1 + hid2 * 2 + out_dim * 2) * 4)     # biases
    vmem_limit = int(min(max(4 * need + (8 << 20), 16 << 20), 48 << 20))
    try:
        vmem_limit = min(vmem_limit,
                         (3 * pltpu.get_tpu_info().vmem_capacity_bytes) // 4)
    except Exception:
        pass  # keep the conservative static clamp

    # Advisory cost estimate (post-folding: 7 dots per grid step).
    macs_per_pos = (2 * in_dim * hid1        # conv_layer1 x 2 views
                    + 2 * hid2 * hid1        # folded conv2a halves
                    + hid2 * hid2            # conv2b
                    + 2 * out_dim * hid2)    # folded out_layer x 2 views
    flops = int(2 * B * HW_pad * macs_per_pos)
    param_bytes = 2 * sum(int(np.prod(p.shape)) for p in
                          (w1_b, w2b_b, w2af0, w2af1, wof0, wof1)) \
        + 4 * sum(int(np.prod(p.shape)) for p in (b1, b2a, b2b, bo0, bo1))
    bytes_accessed = int(2 * (2 * B * in_dim * HW_pad)
                         + 4 * (2 * B * out_dim * HW_pad) + param_bytes)

    out0, out1 = pl.pallas_call(
        _fusion_kernel,
        grid=(B, n_tiles),
        in_specs=in_specs,
        out_specs=out_specs,
        out_shape=out_shape,
        compiler_params=pltpu.CompilerParams(
            dimension_semantics=("parallel", "parallel"),
            vmem_limit_bytes=vmem_limit),
        cost_estimate=pl.CostEstimate(flops=flops, transcendentals=0,
                                      bytes_accessed=bytes_accessed),
    )(x0b, x1b, w2af0, w2af1, wof0, wof1,
      w1_b, b1, b2a, w2b_b, b2b, bo0, bo1)

    # Trim spatial padding; (B, C, HW) -> NCHW is a free reshape again.
    if HW_pad != HW:
        out0 = out0[:, :, :HW]
        out1 = out1[:, :, :HW]
    return [out0.reshape(B, out_dim, H, W), out1.reshape(B, out_dim, H, W)]


def fold_conv_bn(key, cin, cout, eps=1e-5):
    """Deterministic 1x1-conv + BatchNorm params, BN folded (inference mode).
    Weight layout: (Cout, Cin) so that y = W @ x + b in channel-major layout."""
    kw, kb, kg, kbeta, km, kv = jax.random.split(key, 6)
    W = 0.1 * jax.random.normal(kw, (cout, cin), jnp.float32)
    b = 0.1 * jax.random.normal(kb, (cout,), jnp.float32)
    gamma = 1.0 + 0.1 * jax.random.normal(kg, (cout,), jnp.float32)
    beta = 0.1 * jax.random.normal(kbeta, (cout,), jnp.float32)
    mean = 0.1 * jax.random.normal(km, (cout,), jnp.float32)
    var = 0.5 + jax.random.uniform(kv, (cout,), jnp.float32)
    s = gamma / jnp.sqrt(var + eps)
    Wf = W * s[:, None]
    bf = (b - mean) * s + beta
    return Wf, bf.reshape(cout, 1)


def reference_forward(xs, proj_list, proj_inv_list, params, H, W):
    """Pure-JAX f32 NCHW reference mirroring the PyTorch module (eval-mode BN)."""
    (w1, b1, w2a, b2a, w2b, b2b, wo0, bo0, wo1, bo1) = params

    def conv1x1(x, w, b):  # x: NCHW, w: (Cout, Cin), b: (Cout, 1)
        return jnp.einsum('bchw,dc->bdhw', x, w) + b.reshape(1, -1, 1, 1)

    def ftl(z, proj):
        B, C, h, w = z.shape
        N = proj.shape[2]
        zr = z.reshape(B, N, -1)
        out = jnp.einsum('bmn,bnk->bmk', proj, zr)
        return out.reshape(B, -1, h, w)

    zs = []
    for x, pinv in zip(xs, proj_inv_list):
        h1 = jax.nn.relu(conv1x1(x, w1, b1))
        zs.append(ftl(h1, pinv))
    zcat = jnp.concatenate(zs, axis=1)
    f = jax.nn.relu(conv1x1(zcat, w2a, b2a))
    f = jax.nn.relu(conv1x1(f, w2b, b2b))
    outs = []
    for proj, wo, bo in zip(proj_list, (wo0, wo1), (bo0, bo1)):
        z = ftl(f, proj)
        outs.append(jax.nn.relu(conv1x1(z, wo, bo)))
    return outs


if __name__ == "__main__":
    # Small shapes consistent with the module (in_dim=out_dim, hid1=hid2, 2 views).
    # HW = 32*32 = 1024 -> spatial tiles of 256, exercising the (B, tiles) grid
    # with 8 total steps (>= 4 per v7x core).
    B, in_dim, hid1, hid2, H, W = 2, 32, 16, 16, 32, 32
    out_dim = in_dim

    key = jax.random.PRNGKey(0)
    keys = jax.random.split(key, 11)
    x0 = jax.random.normal(keys[0], (B, in_dim, H, W), jnp.float32)
    x1 = jax.random.normal(keys[1], (B, in_dim, H, W), jnp.float32)
    proj0 = 0.3 * jax.random.normal(keys[2], (B, hid1, hid2), jnp.float32)
    proj1 = 0.3 * jax.random.normal(keys[3], (B, hid1, hid2), jnp.float32)
    pinv0 = 0.3 * jax.random.normal(keys[4], (B, hid2, hid1), jnp.float32)
    pinv1 = 0.3 * jax.random.normal(keys[5], (B, hid2, hid1), jnp.float32)

    w1, b1 = fold_conv_bn(keys[6], in_dim, hid1)
    w2a, b2a = fold_conv_bn(keys[7], 2 * hid2, hid2)
    w2b, b2b = fold_conv_bn(keys[8], hid2, hid2)
    wo0, bo0 = fold_conv_bn(keys[9], hid1, out_dim)
    wo1, bo1 = fold_conv_bn(keys[10], hid1, out_dim)
    params = (w1, b1, w2a, b2a, w2b, b2b, wo0, bo0, wo1, bo1)

    xs = [x0, x1]
    proj_list = [proj0, proj1]
    proj_inv_list = [pinv0, pinv1]

    outs = canonical_fusion_forward(xs, proj_list, proj_inv_list, params, H, W)
    outs = [jax.block_until_ready(o) for o in outs]

    refs = reference_forward(xs, proj_list, proj_inv_list, params, H, W)
    for o, r in zip(outs, refs):
        assert o.shape == (B, out_dim, H, W)
        # Tolerance relaxed vs the f32 reference: activations/weights stream in
        # bf16 (f32 accumulation / bias / ReLU), per the perf review.
        np.testing.assert_allclose(np.asarray(o), np.asarray(r),
                                   rtol=5e-2, atol=5e-2)
    print("KERNEL_OK")
</pallas_src>

<mosaic_0001>
module attributes {stable_mosaic.version = 11 : i64} {
  func.func @_fusion_kernel(%arg0: i32, %arg1: i32, %arg2: memref<1x32x256xbf16, #tpu.memory_space<vmem>>, %arg3: memref<1x32x256xbf16, #tpu.memory_space<vmem>>, %arg4: memref<1x16x16xbf16, #tpu.memory_space<vmem>>, %arg5: memref<1x16x16xbf16, #tpu.memory_space<vmem>>, %arg6: memref<1x32x16xbf16, #tpu.memory_space<vmem>>, %arg7: memref<1x32x16xbf16, #tpu.memory_space<vmem>>, %arg8: memref<16x32xbf16, #tpu.memory_space<vmem>>, %arg9: memref<16x1xf32, #tpu.memory_space<vmem>>, %arg10: memref<16x1xf32, #tpu.memory_space<vmem>>, %arg11: memref<16x16xbf16, #tpu.memory_space<vmem>>, %arg12: memref<16x1xf32, #tpu.memory_space<vmem>>, %arg13: memref<32x1xf32, #tpu.memory_space<vmem>>, %arg14: memref<32x1xf32, #tpu.memory_space<vmem>>, %arg15: memref<1x32x256xf32, #tpu.memory_space<vmem>>, %arg16: memref<1x32x256xf32, #tpu.memory_space<vmem>>) attributes {dimension_semantics = [#tpu.dimension_semantics<parallel>, #tpu.dimension_semantics<parallel>], iteration_bounds = array<i64: 2, 4>, scalar_prefetch = 0 : i64, scratch_operands = 0 : i64, tpu.core_type = #tpu.core_type<tc>, window_params = [{transform_indices = @transform_0, window_bounds = array<i64: 1, 32, 256>}, {transform_indices = @transform_1, window_bounds = array<i64: 1, 32, 256>}, {transform_indices = @transform_2, window_bounds = array<i64: 1, 16, 16>}, {transform_indices = @transform_3, window_bounds = array<i64: 1, 16, 16>}, {transform_indices = @transform_4, window_bounds = array<i64: 1, 32, 16>}, {transform_indices = @transform_5, window_bounds = array<i64: 1, 32, 16>}, {pipeline_mode = #tpu.pipeline_mode<synchronous>, transform_indices = @transform_6, window_bounds = array<i64: 16, 32>}, {pipeline_mode = #tpu.pipeline_mode<synchronous>, transform_indices = @transform_7, window_bounds = array<i64: 16, 1>}, {pipeline_mode = #tpu.pipeline_mode<synchronous>, transform_indices = @transform_8, window_bounds = array<i64: 16, 1>}, {pipeline_mode = #tpu.pipeline_mode<synchronous>, transform_indices = @transform_9, window_bounds = array<i64: 16, 16>}, {pipeline_mode = #tpu.pipeline_mode<synchronous>, transform_indices = @transform_10, window_bounds = array<i64: 16, 1>}, {pipeline_mode = #tpu.pipeline_mode<synchronous>, transform_indices = @transform_11, window_bounds = array<i64: 32, 1>}, {pipeline_mode = #tpu.pipeline_mode<synchronous>, transform_indices = @transform_12, window_bounds = array<i64: 32, 1>}, {transform_indices = @transform_13, window_bounds = array<i64: 1, 32, 256>}, {transform_indices = @transform_14, window_bounds = array<i64: 1, 32, 256>}]} {
    %c0 = arith.constant 0 : index
    %c0_0 = arith.constant 0 : index
    %c0_1 = arith.constant 0 : index
    %0 = vector.load %arg2[%c0, %c0_0, %c0_1] : memref<1x32x256xbf16, #tpu.memory_space<vmem>>, vector<1x32x256xbf16>
    %1 = vector.shape_cast %0 : vector<1x32x256xbf16> to vector<32x256xbf16>
    %c0_2 = arith.constant 0 : index
    %c0_3 = arith.constant 0 : index
    %c0_4 = arith.constant 0 : index
    %2 = vector.load %arg3[%c0_2, %c0_3, %c0_4] : memref<1x32x256xbf16, #tpu.memory_space<vmem>>, vector<1x32x256xbf16>
    %3 = vector.shape_cast %2 : vector<1x32x256xbf16> to vector<32x256xbf16>
    %c0_5 = arith.constant 0 : index
    %c0_6 = arith.constant 0 : index
    %4 = vector.load %arg8[%c0_5, %c0_6] : memref<16x32xbf16, #tpu.memory_space<vmem>>, vector<16x32xbf16>
    %c0_7 = arith.constant 0 : index
    %c0_8 = arith.constant 0 : index
    %5 = vector.load %arg9[%c0_7, %c0_8] : memref<16x1xf32, #tpu.memory_space<vmem>>, vector<16x1xf32>
    %cst = arith.constant dense<0.000000e+00> : vector<16x256xf32>
    %6 = tpu.matmul %4, %1, %cst {dimension_numbers = #tpu.dot_dimension_numbers<[1], [0], [0], [1], [0, 0, 1, 1], [], []>} : vector<16x32xbf16>, vector<32x256xbf16>, vector<16x256xf32> -> vector<16x256xf32>
    %7 = vector.broadcast %5 : vector<16x1xf32> to vector<16x256xf32>
    %8 = arith.addf %6, %7 : vector<16x256xf32>
    %cst_9 = arith.constant 0.000000e+00 : f32
    %9 = vector.broadcast %cst_9 : f32 to vector<16x256xf32>
    %10 = arith.maximumf %8, %9 : vector<16x256xf32>
    %11 = arith.truncf %10 : vector<16x256xf32> to vector<16x256xbf16>
    %cst_10 = arith.constant dense<0.000000e+00> : vector<16x256xf32>
    %12 = tpu.matmul %4, %3, %cst_10 {dimension_numbers = #tpu.dot_dimension_numbers<[1], [0], [0], [1], [0, 0, 1, 1], [], []>} : vector<16x32xbf16>, vector<32x256xbf16>, vector<16x256xf32> -> vector<16x256xf32>
    %13 = vector.broadcast %5 : vector<16x1xf32> to vector<16x256xf32>
    %14 = arith.addf %12, %13 : vector<16x256xf32>
    %cst_11 = arith.constant 0.000000e+00 : f32
    %15 = vector.broadcast %cst_11 : f32 to vector<16x256xf32>
    %16 = arith.maximumf %14, %15 : vector<16x256xf32>
    %17 = arith.truncf %16 : vector<16x256xf32> to vector<16x256xbf16>
    %c0_12 = arith.constant 0 : index
    %c0_13 = arith.constant 0 : index
    %c0_14 = arith.constant 0 : index
    %18 = vector.load %arg4[%c0_12, %c0_13, %c0_14] : memref<1x16x16xbf16, #tpu.memory_space<vmem>>, vector<1x16x16xbf16>
    %19 = vector.shape_cast %18 : vector<1x16x16xbf16> to vector<16x16xbf16>
    %cst_15 = arith.constant dense<0.000000e+00> : vector<16x256xf32>
    %20 = tpu.matmul %19, %11, %cst_15 {dimension_numbers = #tpu.dot_dimension_numbers<[1], [0], [0], [1], [0, 0, 1, 1], [], []>} : vector<16x16xbf16>, vector<16x256xbf16>, vector<16x256xf32> -> vector<16x256xf32>
    %c0_16 = arith.constant 0 : index
    %c0_17 = arith.constant 0 : index
    %c0_18 = arith.constant 0 : index
    %21 = vector.load %arg5[%c0_16, %c0_17, %c0_18] : memref<1x16x16xbf16, #tpu.memory_space<vmem>>, vector<1x16x16xbf16>
    %22 = vector.shape_cast %21 : vector<1x16x16xbf16> to vector<16x16xbf16>
    %cst_19 = arith.constant dense<0.000000e+00> : vector<16x256xf32>
    %23 = tpu.matmul %22, %17, %cst_19 {dimension_numbers = #tpu.dot_dimension_numbers<[1], [0], [0], [1], [0, 0, 1, 1], [], []>} : vector<16x16xbf16>, vector<16x256xbf16>, vector<16x256xf32> -> vector<16x256xf32>
    %24 = arith.addf %20, %23 : vector<16x256xf32>
    %c0_20 = arith.constant 0 : index
    %c0_21 = arith.constant 0 : index
    %25 = vector.load %arg10[%c0_20, %c0_21] : memref<16x1xf32, #tpu.memory_space<vmem>>, vector<16x1xf32>
    %26 = vector.broadcast %25 : vector<16x1xf32> to vector<16x256xf32>
    %27 = arith.addf %24, %26 : vector<16x256xf32>
    %cst_22 = arith.constant 0.000000e+00 : f32
    %28 = vector.broadcast %cst_22 : f32 to vector<16x256xf32>
    %29 = arith.maximumf %27, %28 : vector<16x256xf32>
    %30 = arith.truncf %29 : vector<16x256xf32> to vector<16x256xbf16>
    %c0_23 = arith.constant 0 : index
    %c0_24 = arith.constant 0 : index
    %31 = vector.load %arg11[%c0_23, %c0_24] : memref<16x16xbf16, #tpu.memory_space<vmem>>, vector<16x16xbf16>
    %cst_25 = arith.constant dense<0.000000e+00> : vector<16x256xf32>
    %32 = tpu.matmul %31, %30, %cst_25 {dimension_numbers = #tpu.dot_dimension_numbers<[1], [0], [0], [1], [0, 0, 1, 1], [], []>} : vector<16x16xbf16>, vector<16x256xbf16>, vector<16x256xf32> -> vector<16x256xf32>
    %c0_26 = arith.constant 0 : index
    %c0_27 = arith.constant 0 : index
    %33 = vector.load %arg12[%c0_26, %c0_27] : memref<16x1xf32, #tpu.memory_space<vmem>>, vector<16x1xf32>
    %34 = vector.broadcast %33 : vector<16x1xf32> to vector<16x256xf32>
    %35 = arith.addf %32, %34 : vector<16x256xf32>
    %cst_28 = arith.constant 0.000000e+00 : f32
    %36 = vector.broadcast %cst_28 : f32 to vector<16x256xf32>
    %37 = arith.maximumf %35, %36 : vector<16x256xf32>
    %38 = arith.truncf %37 : vector<16x256xf32> to vector<16x256xbf16>
    %c0_29 = arith.constant 0 : index
    %c0_30 = arith.constant 0 : index
    %c0_31 = arith.constant 0 : index
    %39 = vector.load %arg6[%c0_29, %c0_30, %c0_31] : memref<1x32x16xbf16, #tpu.memory_space<vmem>>, vector<1x32x16xbf16>
    %40 = vector.shape_cast %39 : vector<1x32x16xbf16> to vector<32x16xbf16>
    %cst_32 = arith.constant dense<0.000000e+00> : vector<32x256xf32>
    %41 = tpu.matmul %40, %38, %cst_32 {dimension_numbers = #tpu.dot_dimension_numbers<[1], [0], [0], [1], [0, 0, 1, 1], [], []>} : vector<32x16xbf16>, vector<16x256xbf16>, vector<32x256xf32> -> vector<32x256xf32>
    %c0_33 = arith.constant 0 : index
    %c0_34 = arith.constant 0 : index
    %42 = vector.load %arg13[%c0_33, %c0_34] : memref<32x1xf32, #tpu.memory_space<vmem>>, vector<32x1xf32>
    %43 = vector.broadcast %42 : vector<32x1xf32> to vector<32x256xf32>
    %44 = arith.addf %41, %43 : vector<32x256xf32>
    %cst_35 = arith.constant 0.000000e+00 : f32
    %45 = vector.broadcast %cst_35 : f32 to vector<32x256xf32>
    %46 = arith.maximumf %44, %45 : vector<32x256xf32>
    %c0_36 = arith.constant 0 : index
    %c0_37 = arith.constant 0 : index
    %c0_38 = arith.constant 0 : index
    %47 = vector.load %arg15[%c0_36, %c0_37, %c0_38] : memref<1x32x256xf32, #tpu.memory_space<vmem>>, vector<1x32x256xf32>
    %48 = vector.shape_cast %47 : vector<1x32x256xf32> to vector<32x256xf32>
    %49 = vector.shape_cast %46 : vector<32x256xf32> to vector<1x32x256xf32>
    tpu.vector_store %arg15[%c0_36, %c0_37, %c0_38], %49 {strides = array<i32>} : memref<1x32x256xf32, #tpu.memory_space<vmem>>, vector<1x32x256xf32>,
    %c0_39 = arith.constant 0 : index
    %c0_40 = arith.constant 0 : index
    %c0_41 = arith.constant 0 : index
    %50 = vector.load %arg7[%c0_39, %c0_40, %c0_41] : memref<1x32x16xbf16, #tpu.memory_space<vmem>>, vector<1x32x16xbf16>
    %51 = vector.shape_cast %50 : vector<1x32x16xbf16> to vector<32x16xbf16>
    %cst_42 = arith.constant dense<0.000000e+00> : vector<32x256xf32>
    %52 = tpu.matmul %51, %38, %cst_42 {dimension_numbers = #tpu.dot_dimension_numbers<[1], [0], [0], [1], [0, 0, 1, 1], [], []>} : vector<32x16xbf16>, vector<16x256xbf16>, vector<32x256xf32> -> vector<32x256xf32>
    %c0_43 = arith.constant 0 : index
    %c0_44 = arith.constant 0 : index
    %53 = vector.load %arg14[%c0_43, %c0_44] : memref<32x1xf32, #tpu.memory_space<vmem>>, vector<32x1xf32>
    %54 = vector.broadcast %53 : vector<32x1xf32> to vector<32x256xf32>
    %55 = arith.addf %52, %54 : vector<32x256xf32>
    %cst_45 = arith.constant 0.000000e+00 : f32
    %56 = vector.broadcast %cst_45 : f32 to vector<32x256xf32>
    %57 = arith.maximumf %55, %56 : vector<32x256xf32>
    %c0_46 = arith.constant 0 : index
    %c0_47 = arith.constant 0 : index
    %c0_48 = arith.constant 0 : index
    %58 = vector.load %arg16[%c0_46, %c0_47, %c0_48] : memref<1x32x256xf32, #tpu.memory_space<vmem>>, vector<1x32x256xf32>
    %59 = vector.shape_cast %58 : vector<1x32x256xf32> to vector<32x256xf32>
    %60 = vector.shape_cast %57 : vector<32x256xf32> to vector<1x32x256xf32>
    tpu.vector_store %arg16[%c0_46, %c0_47, %c0_48], %60 {strides = array<i32>} : memref<1x32x256xf32, #tpu.memory_space<vmem>>, vector<1x32x256xf32>,
    return
  }
  func.func @transform_0(%arg0: i32, %arg1: i32) -> (i32, i32, i32) {
    %c0_i32 = arith.constant 0 : i32
    %c0_i32_0 = arith.constant 0 : i32
    return %arg0, %c0_i32, %arg1 : i32, i32, i32
  }
  func.func @transform_1(%arg0: i32, %arg1: i32) -> (i32, i32, i32) {
    %c0_i32 = arith.constant 0 : i32
    %c0_i32_0 = arith.constant 0 : i32
    return %arg0, %c0_i32, %arg1 : i32, i32, i32
  }
  func.func @transform_2(%arg0: i32, %arg1: i32) -> (i32, i32, i32) {
    %c0_i32 = arith.constant 0 : i32
    %c0_i32_0 = arith.constant 0 : i32
    %c0_i32_1 = arith.constant 0 : i32
    return %arg0, %c0_i32, %c0_i32_0 : i32, i32, i32
  }
  func.func @transform_3(%arg0: i32, %arg1: i32) -> (i32, i32, i32) {
    %c0_i32 = arith.constant 0 : i32
    %c0_i32_0 = arith.constant 0 : i32
    %c0_i32_1 = arith.constant 0 : i32
    return %arg0, %c0_i32, %c0_i32_0 : i32, i32, i32
  }
  func.func @transform_4(%arg0: i32, %arg1: i32) -> (i32, i32, i32) {
    %c0_i32 = arith.constant 0 : i32
    %c0_i32_0 = arith.constant 0 : i32
    %c0_i32_1 = arith.constant 0 : i32
    return %arg0, %c0_i32, %c0_i32_0 : i32, i32, i32
  }
  func.func @transform_5(%arg0: i32, %arg1: i32) -> (i32, i32, i32) {
    %c0_i32 = arith.constant 0 : i32
    %c0_i32_0 = arith.constant 0 : i32
    %c0_i32_1 = arith.constant 0 : i32
    return %arg0, %c0_i32, %c0_i32_0 : i32, i32, i32
  }
  func.func @transform_6(%arg0: i32, %arg1: i32) -> (i32, i32) {
    %c0_i32 = arith.constant 0 : i32
    %c0_i32_0 = arith.constant 0 : i32
    %c0_i32_1 = arith.constant 0 : i32
    return %c0_i32, %c0_i32_0 : i32, i32
  }
  func.func @transform_7(%arg0: i32, %arg1: i32) -> (i32, i32) {
    %c0_i32 = arith.constant 0 : i32
    %c0_i32_0 = arith.constant 0 : i32
    %c0_i32_1 = arith.constant 0 : i32
    return %c0_i32, %c0_i32_0 : i32, i32
  }
  func.func @transform_8(%arg0: i32, %arg1: i32) -> (i32, i32) {
    %c0_i32 = arith.constant 0 : i32
    %c0_i32_0 = arith.constant 0 : i32
    %c0_i32_1 = arith.constant 0 : i32
    return %c0_i32, %c0_i32_0 : i32, i32
  }
  func.func @transform_9(%arg0: i32, %arg1: i32) -> (i32, i32) {
    %c0_i32 = arith.constant 0 : i32
    %c0_i32_0 = arith.constant 0 : i32
    %c0_i32_1 = arith.constant 0 : i32
    return %c0_i32, %c0_i32_0 : i32, i32
  }
  func.func @transform_10(%arg0: i32, %arg1: i32) -> (i32, i32) {
    %c0_i32 = arith.constant 0 : i32
    %c0_i32_0 = arith.constant 0 : i32
    %c0_i32_1 = arith.constant 0 : i32
    return %c0_i32, %c0_i32_0 : i32, i32
  }
  func.func @transform_11(%arg0: i32, %arg1: i32) -> (i32, i32) {
    %c0_i32 = arith.constant 0 : i32
    %c0_i32_0 = arith.constant 0 : i32
    %c0_i32_1 = arith.constant 0 : i32
    return %c0_i32, %c0_i32_0 : i32, i32
  }
  func.func @transform_12(%arg0: i32, %arg1: i32) -> (i32, i32) {
    %c0_i32 = arith.constant 0 : i32
    %c0_i32_0 = arith.constant 0 : i32
    %c0_i32_1 = arith.constant 0 : i32
    return %c0_i32, %c0_i32_0 : i32, i32
  }
  func.func @transform_13(%arg0: i32, %arg1: i32) -> (i32, i32, i32) {
    %c0_i32 = arith.constant 0 : i32
    %c0_i32_0 = arith.constant 0 : i32
    return %arg0, %c0_i32, %arg1 : i32, i32, i32
  }
  func.func @transform_14(%arg0: i32, %arg1: i32) -> (i32, i32, i32) {
    %c0_i32 = arith.constant 0 : i32
    %c0_i32_0 = arith.constant 0 : i32
    return %arg0, %c0_i32, %arg1 : i32, i32, i32
  }
}

</mosaic_0001>

<bundles_post_ra>
// kernel: tpu_custom_call.1
= control target key start
LH: loop header
LB: loop body
LE: loop exit
PB: predicated region body
PF: predicated region fallthrough
CT: control target
= control target key end

     0   :  { %s2364_s0 = inlined_call_operand.hbm [shape: bf16[2,32,1024], index: 0, kind: input, shape index: {}]   ;;  %s2365_s1 = inlined_call_operand.hbm [shape: bf16[2,32,1024], index: 1, kind: input, shape index: {}]   ;;  %s2366_s2 = inlined_call_operand.vmem [shape: bf16[2,16,16], index: 2, kind: input, shape index: {}]   ;;  %s2367_s3 = inlined_call_operand.vmem [shape: bf16[2,16,16], index: 3, kind: input, shape index: {}]   ;;  %s2368_s4 = inlined_call_operand.vmem [shape: bf16[2,32,16], index: 4, kind: input, shape index: {}]   ;;  %s2369_s5 = inlined_call_operand.vmem [shape: bf16[2,32,16], index: 5, kind: input, shape index: {}]   ;;  %s2370_s6 = inlined_call_operand.vmem [shape: bf16[16,32], index: 6, kind: input, shape index: {}]   ;;  %s2371_s7 = inlined_call_operand.vmem [shape: f32[16,1], index: 7, kind: input, shape index: {}]   ;;  %s2372_s8 = inlined_call_operand.vmem [shape: f32[16,1], index: 8, kind: input, shape index: {}]   ;;  %s2373_s9 = inlined_call_operand.vmem [shape: bf16[16,16], index: 9, kind: input, shape index: {}]   ;;  %s2374_s10 = inlined_call_operand.vmem [shape: f32[16,1], index: 10, kind: input, shape index: {}]   ;;  %s2375_s11 = inlined_call_operand.vmem [shape: f32[32,1], index: 11, kind: input, shape index: {}]   ;;  %s2376_s12 = inlined_call_operand.vmem [shape: f32[32,1], index: 12, kind: input, shape index: {}]   ;;  %s2377_s13 = inlined_call_operand.hbm [shape: f32[2,32,1024], index: 13, kind: output, shape index: {0}]   ;;  %s2378_s14 = inlined_call_operand.hbm [shape: f32[2,32,1024], index: 14, kind: output, shape index: {1}]  }
   0x1   :  { %2394 = sst [smem:[#allocation24_spill]] %s2364_s0 }
   0x2   :  { %2395 = sst [smem:[#allocation25_spill]] %s2368_s4 }
   0x3   :  { %2396 = sst [smem:[#allocation26_spill]] %s2369_s5 }
   0x4   :  { %2397 = sst [smem:[#allocation27_spill]] %s2377_s13 }
   0x5   :  { %2398 = sst [smem:[#allocation28_spill]] %s2378_s14 }
   0x6   :  { %20 = vsyncpa [#allocation3], 0 }
   0x7   :  { %22 = vsyncpa [#allocation3 + $0x1], 0 }
   0x8   :  { %23 = vsyncpa [#allocation6], 0 }
   0x9   :  { %25 = vsyncpa [#allocation6 + $0x1], 0 }
   0xa   :  { %26 = vsyncpa [#allocation4], 0 }
   0xb   :  { %28 = vsyncpa [#allocation4 + $0x1], 0 }
   0xc   :  { %29 = vsyncpa [#allocation9], 0 }
   0xd   :  { %31 = vsyncpa [#allocation9 + $0x1], 0  ;;  %s1946_s29 = smov 0   ;;  %s1948_s30 = smov 0  }
   0xe   :  { %s1950_s15 = smov 0   ;;  %s1952_s16 = smov 0  }
   0xf   :  { %s1954_s17 = smov 0   ;;  %s1956_s18 = smov 0  }
  0x10   :  { %s1958_s19 = smov 0   ;;  %s1960_s20 = smov 0  }
  0x11 LB: > { %2399 = sst [smem:[#allocation14_spill]] %s1830_s29  ;;  %s1479_s21 = sadd.s32 4294967295, %s1858_s20   ;;  %s1858_s20 = sphi %s1960_s20, %s37_s20   ;;  %s1854_s19 = sphi %s1958_s19, %s2436_s19   ;;  %s1850_s18 = sphi %s1956_s18, %s2435_s18   ;;  %s1846_s17 = sphi %s1954_s17, %s2434_s17   ;;  %s1842_s16 = sphi %s1952_s16, %s2433_s16   ;;  %s1838_s15 = sphi %s1950_s15, %s2432_s15   ;;  %s1834_s30 = sphi %s1948_s30, %s2438_s30   ;;  %s1830_s29 = sphi %s1946_s29, %s2437_s29  }
  0x12   : > { %2400 = sst [smem:[#allocation15_spill]] %s1838_s15  ;;  %s1480_s22 = sadd.s32 4294967294, %s1858_s20  }
  0x13   : > { %2401 = sst [smem:[#allocation16_spill]] %s1842_s16  ;;  %s46_s23 = sadd.s32 1, %s1850_s18 }
  0x14   : > { %2402 = sst [smem:[#allocation17_spill]] %s1850_s18  ;;  %s49_s24 = sadd.s32 1, %s1854_s19 }
  0x15   : > { %2403 = sst [smem:[#allocation18_spill]] %s1854_s19  ;;  %p47_p0 = scmp.ge.s32.totalorder %s46_s23, 4 }
  0x16   : > { %s58_s25 = sadd.s32 1, %s1838_s15  ;;  %p65_p1 = scmp.ne.s32.totalorder %s1838_s15, %s1834_s30 }
  0x17   : > { %p66_p2 = scmp.eq.s32.totalorder %s1858_s20, 0  ;;  %s2440_s23 = smov (%p47_p0, %s46_s23), 0 }
  0x18   : > { %2404 = sst [smem:[#allocation19_spill]] %s2440_s23  ;;  %s2442_s24 = smov (!%p47_p0, %s49_s24), %s1854_s19 }
  0x19   : > { %s54_s26 = ssub.s32 %s1850_s18, %s2440_s23  ;;  %p1999_p3 = por %p66_p2, %p65_p1 }
  0x1a   : > { %p51_p4 = scmp.ge.s32.totalorder %s2442_s24, 2  ;;  %p71_p5 = scmp.ne.s32.totalorder %s1834_s30, %s1830_s29 }
  0x1b   : > { %p72_p6 = scmp.eq.s32.totalorder %s1479_s21, 0  ;;  %p376_p7 = scmp.eq.s32.totalorder %s1479_s21, 7 }
  0x1c   : > { %s2444_s24 = smov (%p51_p4, %s2442_s24), 0  ;;  %p382_p10 = scmp.eq.s32.totalorder %s1480_s22, 7 }
  0x1d   : > { %2406 = sst [smem:[#allocation20_spill]] %s2444_s24  ;;  %p2007_p8 = por %p72_p6, %p71_p5 }
  0x1e   : > { %p2011_p9 = por %p376_p7, %p65_p1  ;;  %s53_s14 = ssub.s32 %s1854_s19, %s2444_s24 }
  0x1f   : > { %s2407_s28 = scalar_select %p2007_p8, 1, 0 }
  0x20   : > { %s2408_s23 = scalar_select %p2011_p9, 1, 0 }
  0x21   : > { %s55_s13 = sor.u32 %s54_s26, %s53_s14  ;;  %p2017_p12 = por %p382_p10, %p71_p5 }
  0x22   : > { %2409 = sst [smem:[#allocation21_spill]] %s2408_s23  ;;  %p56_p11 = scmp.eq.s32.totalorder %s55_s13, 0 }
  0x23   : > { %s2410_s29 = scalar_select %p2017_p12, 1, 0 }
  0x24   : > { %p1569_p13 = scmp.lt.s32.totalorder %s1858_s20, 8  ;;  %s2023_s21 = sand.u32 1, %s1838_s15  }
  0x25   : > { %2411 = sst [smem:[#allocation22_spill]] %s2410_s29  ;;  %s2387_s5 = sshll.u32 %s2023_s21, 5 }
  0x26   : > { %s2026_s16 = scalar_select %p56_p11, %s1838_s15, %s58_s25  }
  0x27   : > { %s1484_s23 = sshll.u32 %s1850_s18, 1  ;;  %s1485_s24 = sshll.u32 %s1854_s19, 5 }
  0x28   : > { %2412 = sst [smem:[#allocation23_spill]] %s2026_s16  ;;  %s455_s22 = scalar_lea.vmem [#allocation2], %s2387_s5 }
  0x29   : > { %s464_s14 = sshll.u32 %s455_s22, 4  ;;  %s2033_s26 = sadd.s32 %s1485_s24, %s1484_s23  ;;  %s2035_s14 = int_to_ptr.vmem [resolvable:$true] %s464_s14 }
  0x2a   : > { %s2388_s13 = sshll.u32 %s2033_s26, 6  ;;  %p2040_p0 = pnand %p1569_p13, %p1999_p3 }
  0x2b   : > { %s2414_s0 = sld [smem:[#allocation24_spill]] }
  0x2c   : > { %p1666_p3 = pneg %p2040_p0 }
  0x31   : > { %s2049_s5 = scalar_lea.hbm %s2414_s0, %s2388_s13  ;;  %s1669_s22 = scalar_lea.hbm %s2414_s0, 4096 }
  0x32   : > { %s1664_s24 = scalar_lea.hbm %s2049_s5, 512  ;;  %p1670_p6 = scmp.lt.u32.totalorder %s2049_s5, %s2414_s0 }
  0x33   : > { %p1665_p2 = scmp.ne.s32.totalorder %s2049_s5, %s1664_s24  ;;  %p1671_p7 = scmp.lt.u32.totalorder %s1669_s22, %s1664_s24 }
  0x34   : > { %p1673_p11 = scmp.lt.u32.totalorder %s1664_s24, %s2049_s5 }
  0x35   : > { %p1667_p4 = pnand %p1666_p3, %p1665_p2  ;;  %p1672_p10 = por %p1671_p7, %p1670_p6 }
  0x37   : > { %p1668_p5 = pneg %p1667_p4  ;;  %p1674_p13 = por %p1673_p11, %p1672_p10 }
  0x39   : > { %p1675_p1 = pnand %p1674_p13, %p1668_p5 }
  0x3b   : > { %1678 = shalt.err (!%p1675_p1)
}
  0x3c   : > { %s1679_s23 = scalar_lea.vmem %s2035_s14, 512  ;;  %s1860_s27 = smov [#allocation2]  }
  0x3d   : > { %p1680_p2 = scmp.ne.s32.totalorder %s2035_s14, %s1679_s23  ;;  %s1684_s16 = sshll.u32 %s1860_s27, 4  ;;  %s1685_s16 = int_to_ptr.vmem [resolvable:$false] %s1684_s16 }
  0x3e   : > { %s1686_s13 = scalar_lea.vmem %s1685_s16, 1024  ;;  %p1687_p9 = scmp.lt.s32.totalorder %s2035_s14, %s1685_s16 }
  0x3f   : > { %p1682_p4 = pnand %p1680_p2, %p1666_p3  ;;  %p1688_p6 = scmp.lt.s32.totalorder %s1686_s13, %s1679_s23 }
  0x41   : > { %p1683_p12 = pneg %p1682_p4  ;;  %p1689_p7 = por %p1688_p6, %p1687_p9 }
  0x43   : > { %p1690_p10 = pnand %p1689_p7, %p1683_p12 }
  0x45   : > { %1693 = shalt.err (!%p1690_p10)
}
  0x46   : > { %s1861_s24 = smov 512   ;;  %s1862_s22 = smov 128  }
  0x47   : > { %s1863_s25 = smov 8   ;;  %s2415_s23 = scalar_lea.sflag [#allocation3], %s2023_s21 }
  0x48   : > { %1558 = dma.hbm_to_vmem [thread:$0]  (!%p2040_p0), %s2049_s5, 512, %s2035_s14, %s2415_s23, %s1861_s24, %s1862_s22, %s1863_s25  }
  0x49   : > { %p527_p9 = scmp.lt.s32.totalorder %s1858_s20, 9  ;;  %s2416_s27 = sshll.u32 %s2033_s26, 6 }
  0x4a   : > { %s2089_s0 = scalar_lea.hbm %s2365_s1, %s2416_s27  ;;  %p2417_p12 = scmp.ge.s32.totalorder %s1858_s20, 1 }
  0x4b   : > { %s2419_s18 = sshll.u32 %s2023_s21, 5  ;;  %s475_s5 = scalar_lea.sflag [#allocation6], %s2023_s21 }
  0x4c   : > { %p2093_p1 = pnand %p2417_p12, %p527_p9  ;;  %s478_s15 = scalar_lea.vmem [#allocation5], %s2419_s18 }
  0x4d   : > { %s487_s4 = sshll.u32 %s478_s15, 4  ;;  %s1694_s14 = scalar_lea.hbm %s2089_s0, 512  ;;  %s2099_s4 = int_to_ptr.vmem [resolvable:$true] %s487_s4 }
  0x4e   : > { %p1695_p5 = scmp.ne.s32.totalorder %s2089_s0, %s1694_s14  ;;  %s1699_s27 = scalar_lea.hbm %s2365_s1, 4096 }
  0x4f   : > { %p1700_p2 = scmp.lt.u32.totalorder %s2089_s0, %s2365_s1  ;;  %p1701_p4 = scmp.lt.u32.totalorder %s1699_s27, %s1694_s14 }
  0x50   : > { %p1697_p11 = pnand %p1695_p5, %p1666_p3  ;;  %p1703_p7 = scmp.lt.u32.totalorder %s1694_s14, %s2089_s0 }
  0x51   : > { %p1702_p6 = por %p1701_p4, %p1700_p2 }
  0x52   : > { %p1698_p13 = pneg %p1697_p11 }
  0x53   : > { %p1704_p10 = por %p1703_p7, %p1702_p6 }
  0x55   : > { %p1705_p9 = pnand %p1704_p10, %p1698_p13 }
  0x57   : > { %1708 = shalt.err (!%p1705_p9)
}
  0x58   : > { %s1709_s15 = scalar_lea.vmem %s2099_s4, 512  ;;  %s1864_s18 = smov [#allocation5]  }
  0x59   : > { %p1710_p12 = scmp.ne.s32.totalorder %s2099_s4, %s1709_s15  ;;  %s1714_s26 = sshll.u32 %s1864_s18, 4  ;;  %s1715_s26 = int_to_ptr.vmem [resolvable:$false] %s1714_s26 }
  0x5a   : > { %s1716_s23 = scalar_lea.vmem %s1715_s26, 1024  ;;  %p1717_p8 = scmp.lt.s32.totalorder %s2099_s4, %s1715_s26 }
  0x5b   : > { %p1712_p5 = pnand %p1710_p12, %p1666_p3  ;;  %p1718_p2 = scmp.lt.s32.totalorder %s1716_s23, %s1709_s15 }
  0x5d   : > { %p1713_p11 = pneg %p1712_p5  ;;  %p1719_p4 = por %p1718_p2, %p1717_p8 }
  0x5f   : > { %p1720_p6 = pnand %p1719_p4, %p1713_p11 }
  0x61   : > { %1723 = shalt.err (!%p1720_p6)
}
  0x62   : > { %1561 = dma.hbm_to_vmem [thread:$0]  (!%p2040_p0), %s2089_s0, 512, %s2099_s4, %s475_s5, %s1861_s24, %s1862_s22, %s1863_s25  }
  0x63   : > { %531 = sbr.rel (%p2093_p1) target bundleno = 1072 (0x430), region = 72  ;;  %s2133_s14 = sand.u32 (!%p2093_p1), 1, %s1834_s30  }
  0x64   : > { %s1492_s27 = sshll.u32 (!%p2093_p1), %s2133_s14, 5  ;;  %s534_s16 = scalar_lea.sflag (!%p2093_p1), [#allocation3], %s2133_s14 }
  0x65   : > { %s537_s29 = scalar_lea.vmem (!%p2093_p1), [#allocation2], %s1492_s27  ;;  %p2420_p8 = scmp.ne.s32.totalorder (!%p2093_p1), %s2407_s28, 0 }
  0x6a   : > { %1813 = dma.done.wait (%p2420_p8), %s534_s16, 512  }
  0x6b   : > { %1815 = vsyncadd (%p2420_p8), %s534_s16, 4294966784  ;;  %s543_s0 = scalar_lea.sflag [#allocation6], %s2133_s14  ;;  %s546_s4 = scalar_lea.vmem [#allocation5], %s1492_s27 }
  0x6c   : > { %1817 = dma.done.wait (%p2420_p8), %s543_s0, 512  }
  0x6d   : > { %1819 = vsyncadd (%p2420_p8), %s543_s0, 4294966784  ;;  %v1865_v0 = vmov 0   ;;  %v1644_v1 = vld [vmem:[%s537_s29 + $0x4] ss:$8 sps:$4 sm:$0xff]   ;;  %v1648_v3 = vld [vmem:[%s537_s29] ss:$8 sps:$4 sm:$0xff]  }
  0x6e   : > { %729 = vmatprep.mubr.bf16.mxu0 %v1865_v0  ;;  %798 = vmatprep.mubr.bf16.mxu1 %v1865_v0  ;;  %v1646_v2 = vld [vmem:[%s546_s4 + $0x4] ss:$8 sps:$4 sm:$0xff]   ;;  %v1649_v4 = vld [vmem:[%s546_s4] ss:$8 sps:$4 sm:$0xff]   ;;  %v1650_v5 = vld [vmem:[%s537_s29 + $0x14] ss:$8 sps:$4 sm:$0xff]  }
  0x6f   : > { %1642 = vset.pattern.permute.xlu0 %v1865_v0  ;;  %1643 = vset.pattern.permute.xlu1 %v1865_v0  ;;  %v1652_v6 = vld [vmem:[%s546_s4 + $0x14] ss:$8 sps:$4 sm:$0xff]   ;;  %v1654_v7 = vld [vmem:[%s537_s29 + $0x10] ss:$8 sps:$4 sm:$0xff]   ;;  %v656_v9 = vld [vmem:[%s2371_s7] sm:$0xff]  ;;  %vm693_vm0 = vcmask 261120  }
  0x70   : > { %697 = vmatprep.subr.bf16.mxu0 %v1644_v1  ;;  %766 = vmatprep.subr.bf16.mxu1 %v1646_v2  ;;  %v1655_v8 = vld [vmem:[%s546_s4 + $0x10] ss:$8 sps:$4 sm:$0xff]   ;;  %v1656_v10 = vld [vmem:[%s2370_s6] sm:$0xff]   ;;  %v657_v11 = vld [vmem:[%s2371_s7 + $0x8] sm:$0xff]  ;;  %p623_p0 = scmp.lt.s32.totalorder %s1846_s17, 1  ;;  %vm824_vm1 = vcmask 130048  }
  0x71   : > { %698 = vmatpush1.bf16.msra.mxu0 %v1648_v3  ;;  %767 = vmatpush1.bf16.msra.mxu1 %v1649_v4  ;;  %v946_v12 = vld [vmem:[%s2374_s10] sm:$0xff]  ;;  %v1021_v14 = vld [vmem:[%s2375_s11 + $0x10] sm:$0xff]  ;;  %v923_v18 = vld [vmem:[%s2372_s8 + $0x8] sm:$0xff]  ;;  %s2421_s26 = sld [smem:[#allocation25_spill]]  ;;  %s2422_s29 = sld [smem:[#allocation26_spill]] }
  0x72   : > { %699 = vmatprep.subr.bf16.mxu0 %v1650_v5  ;;  %768 = vmatprep.subr.bf16.mxu1 %v1652_v6  ;;  %v1019_v13 = vld [vmem:[%s2375_s11] sm:$0xff]  ;;  %v1134_v16 = vld [vmem:[%s2376_s12 + $0x10] sm:$0xff]  ;;  %s2178_s4 = scalar_select %p623_p0, %s1846_s17, 1  ;;  %v947_v19 = vld [vmem:[%s2374_s10 + $0x8] sm:$0xff] }
  0x73   : > { %660 = vperm.xlu0 %1642, %v656_v9   ;;  %v1132_v15 = vld [vmem:[%s2376_s12] sm:$0xff]  ;;  %v1020_v20 = vld [vmem:[%s2375_s11 + $0x8] sm:$0xff]  ;;  %v1022_v21 = vld [vmem:[%s2375_s11 + $0x18] sm:$0xff]  ;;  %s1532_s21 = sshll.u32 %s1846_s17, 5  ;;  %s2424_s15 = sld [smem:[#allocation21_spill]] }
  0x74   : > { %s1539_s19 = sshll.u32 %s2178_s4, 3  ;;  %v922_v17 = vld [vmem:[%s2372_s8] sm:$0xff]  ;;  %v1133_v22 = vld [vmem:[%s2376_s12 + $0x8] sm:$0xff]  ;;  %v1135_v23 = vld [vmem:[%s2376_s12 + $0x18] sm:$0xff]  ;;  %s1541_s13 = sshll.u32 %s2178_s4, 4 }
  0x75   : > { %700 = vmatpush1.bf16.msra.mxu0 %v1654_v7  ;;  %769 = vmatpush1.bf16.msra.mxu1 %v1655_v8  ;;  %s2184_s24 = scalar_lea.vmem %s2367_s3, %s1539_s19  ;;  %s2189_s5 = scalar_lea.vmem %s2366_s2, %s1539_s19  ;;  %v1659_v9 = vld [vmem:[%s2373_s9] sm:$0xff]  }
  0x76   : > { %926 = vperm.xlu1 %1643, %v922_v17   ;;  %v1657_v54 = vld [vmem:[%s2184_s24] sm:$0xff]   ;;  %s1494_s4 = sshll.u32 %s2133_s14, 6  ;;  %s2423_s19 = sld [smem:[#allocation16_spill]] }
  0x77   : > { %665 = vperm.xlu0 %1642, %v657_v11   ;;  %v1658_v55 = vld [vmem:[%s2189_s5] sm:$0xff]   ;;  %s637_s23 = scalar_lea.vmem %s2421_s26, %s1541_s13  ;;  %s642_s0 = scalar_lea.vmem %s2422_s29, %s1541_s13 }
  0x78   : > { %1509 = vmatmul.mubr.msk.bf16.vlgmr.msra.gmra.mrb[0].mxu0 %vm693_vm0, %v1656_v10  ;;  %1514 = vmatmul.mubr.msk.bf16.vlgmr.msra.gmra.mrb[0].mxu1 %vm693_vm0, %v1656_v10  ;;  %s2241_s22 = scalar_lea.vmem [#allocation7], %s1494_s4  ;;  %s2244_s25 = scalar_lea.vmem [#allocation8], %s1494_s4 }
  0x79   : > { %860 = vmatprep.mubr.bf16.mxu0 %v1865_v0  ;;  %998 = vmatprep.mubr.bf16.mxu1 %v1865_v0  ;;  %s1262_s24 = sshll.u32 %s2241_s22, 4  ;;  %s1280_s5 = sshll.u32 %s2244_s25, 4  ;;  %s2258_s24 = int_to_ptr.vmem [resolvable:$true] %s1262_s24  ;;  %s2261_s5 = int_to_ptr.vmem [resolvable:$true] %s1280_s5 }
  0x7a   : > { %931 = vperm.xlu1 %1643, %v923_v18   ;;  %p2427_p1 = scmp.ne.s32.totalorder %s2424_s15, 0 }
  0x7b   : > { %950 = vperm.xlu0 %1642, %v946_v12  }
  0x7c   : > { %s1531_s28 = sshll.u32 %s2423_s19, 1  ;;  %s1242_s19 = scalar_lea.sflag [#allocation4], %s2133_s14 }
  0x7d   : > { %s2251_s17 = sadd.s32 %s1532_s21, %s1531_s28  ;;  %s1724_s28 = scalar_lea.vmem %s2258_s24, 1024 }
  0x7e   : > { %955 = vperm.xlu1 %1643, %v947_v19   ;;  %s1533_s13 = sshll.u32 %s2251_s17, 7  ;;  %p1725_p3 = scmp.ne.s32.totalorder %s2258_s24, %s1724_s28 }
  0x7f   : > { %1025 = vperm.xlu0 %1642, %v1019_v13   ;;  %s1866_s21 = smov [#allocation7]  }
  0x80   : > { %p1726_p13 = pnand %p1725_p3, %p2427_p1  ;;  %s1728_s17 = sshll.u32 %s1866_s21, 4  ;;  %s1729_s17 = int_to_ptr.vmem [resolvable:$false] %s1728_s17 }
  0x81   : > { %s1730_s18 = scalar_lea.vmem %s1729_s17, 2048  ;;  %p1731_p10 = scmp.lt.s32.totalorder %s2258_s24, %s1729_s17 }
  0x82   : > { %1030 = vperm.xlu1 %1643, %v1020_v20   ;;  %p1727_p7 = pneg %p1726_p13  ;;  %p1732_p9 = scmp.lt.s32.totalorder %s1730_s18, %s1724_s28 }
  0x83   : > { %1035 = vperm.xlu0 %1642, %v1021_v14  }
  0x84   : > { %p1733_p12 = por %p1732_p9, %p1731_p10 }
  0x86   : > { %1040 = vperm.xlu1 %1643, %v1022_v21   ;;  %p1734_p5 = pnand %p1733_p12, %p1727_p7 }
  0x87   : > { %1138 = vperm.xlu0 %1642, %v1132_v15  }
  0x8a   : > { %1143 = vperm.xlu1 %1643, %v1133_v22  }
  0x8b   : > { %1148 = vperm.xlu0 %1642, %v1134_v16  }
  0x8e   : > { %1153 = vperm.xlu1 %1643, %v1135_v23  }
  0xf2   : > { %v661_v24 = vpop.permute.xlu0 %660 }
  0xf5   : > { %v927_v56 = vpop.permute.xlu1 %926 }
  0xf6   : > { %v666_v25 = vpop.permute.xlu0 %665 }
  0xf9   : > { %v932_v60 = vpop.permute.xlu1 %931 }
  0xfa   : > { %v951_v10 = vpop.permute.xlu0 %950 }
  0xfd   : > { %v956_v14 = vpop.permute.xlu1 %955 }
 0x14b   : > { %v731_v26 = vpop.f32.mrb[0].mxu0  ;;  %v800_v27 = vpop.f32.mrb[0].mxu1 }
 0x14c   : > { %v732_v28 = vadd.f32 %v731_v26, %v661_v24  ;;  %v801_v29 = vadd.f32 %v800_v27, %v661_v24  ;;  %v733_v30 = vpop.f32.mrb[1].mxu0  ;;  %v802_v31 = vpop.f32.mrb[1].mxu1  ;;  %v1660_v26 = vld [vmem:[%s637_s23] sm:$0xff]  }
 0x14d   : > { %v734_v32 = vadd.f32 %v733_v30, %v661_v24  ;;  %v803_v33 = vadd.f32 %v802_v31, %v661_v24  ;;  %v735_v34 = vpop.f32.mrb[2].mxu0  ;;  %v804_v35 = vpop.f32.mrb[2].mxu1  ;;  %v1661_v27 = vld [vmem:[%s642_s0] sm:$0xff]  }
 0x14e   : > { %v736_v36 = vadd.f32 %v735_v34, %v666_v25  ;;  %v805_v37 = vadd.f32 %v804_v35, %v666_v25  ;;  %v737_v38 = vpop.f32.mrb[3].mxu0  ;;  %v806_v39 = vpop.f32.mrb[3].mxu1  ;;  %v740_v42 = vmax.f32 %v732_v28, 0.0  ;;  %v809_v43 = vmax.f32 %v801_v29, 0.0  ;;  %v1662_v28 = vld [vmem:[%s637_s23 + $0x8] sm:$0xff]   ;;  %s2425_s23 = sld [smem:[#allocation27_spill]] }
 0x14f   : > { %v738_v40 = vadd.f32 %v737_v38, %v666_v25  ;;  %v807_v41 = vadd.f32 %v806_v39, %v666_v25  ;;  %v741_v46 = vmax.f32 %v734_v32, 0.0  ;;  %v810_v47 = vmax.f32 %v803_v33, 0.0  ;;  %v1663_v29 = vld [vmem:[%s642_s0 + $0x8] sm:$0xff]   ;;  %v1026_v30 = vpop.permute.xlu0 %1025  ;;  %v1031_v31 = vpop.permute.xlu1 %1030  ;;  %s2426_s0 = sld [smem:[#allocation28_spill]] }
 0x150   : > { %v742_v44 = vmax.f32 %v736_v36, 0.0  ;;  %v811_v45 = vmax.f32 %v805_v37, 0.0 }
 0x151   : > { %v743_v48 = vmax.f32 %v738_v40, 0.0  ;;  %v812_v49 = vmax.f32 %v807_v41, 0.0 }
 0x152   : > { %v744_v50 = vpack.c.bf16 %v742_v44, %v740_v42  ;;  %v813_v51 = vpack.c.bf16 %v811_v45, %v809_v43 }
 0x153   : > { %v745_v52 = vpack.c.bf16 %v743_v48, %v741_v46  ;;  %v814_v53 = vpack.c.bf16 %v812_v49, %v810_v47  ;;  %v1036_v32 = vpop.permute.xlu0 %1035  ;;  %v2236_v33 = vpop.permute.xlu1 %1040 }
 0x154   : > { %s2269_s27 = scalar_lea.hbm %s2425_s23, %s1533_s13 }
 0x155   : > { %828 = vmatprep.subr.bf16.mxu0 %v814_v53  ;;  %s2278_s4 = scalar_lea.hbm %s2426_s0, %s1533_s13 }
 0x156   : > { %829 = vmatpush1.bf16.msra.mxu0 %v813_v51 }
 0x157   : > { %879 = vmatprep.subr.bf16.mxu0 %v745_v52  ;;  %v1139_v34 = vpop.permute.xlu0 %1138  ;;  %v1144_v35 = vpop.permute.xlu1 %1143 }
 0x159   : > { %1516 = vmatmul.mubr.msk.bf16.vlgmr.msra.gmra.mrb[4].mxu0 %vm824_vm1, %v1657_v54 }
 0x15a   : > { %880 = vmatpush1.bf16.msra.mxu0 %v744_v50  ;;  %911 = vmatprep.mubr.bf16.mxu0 %v1865_v0 }
 0x165   : > { %1518 = vmatmul.mubr.msk.bf16.vlgmr.msra.gmra.mrb[4].mxu0 %vm824_vm1, %v1658_v55 }
 0x166   : > { %1204 = vmatprep.mubr.bf16.mxu0 %v1865_v0 }
 0x238   : > { %v913_v57 = vpop.f32.mrb[4].mxu0 }
 0x239   : > { %v934_v58 = vadd.f32 %v927_v56, %v913_v57  ;;  %v915_v59 = vpop.f32.mrb[5].mxu0 }
 0x23a   : > { %v935_v61 = vadd.f32 %v927_v56, %v915_v59  ;;  %v917_v62 = vpop.f32.mrb[6].mxu0  ;;  %v1149_v59 = vpop.permute.xlu0 %1148 }
 0x23b   : > { %v936_v63 = vadd.f32 %v932_v60, %v917_v62  ;;  %v919_v1 = vpop.f32.mrb[7].mxu0  ;;  %v938_v3 = vmax.f32 %v934_v58, 0.0 }
 0x23c   : > { %v937_v2 = vadd.f32 %v932_v60, %v919_v1  ;;  %v939_v5 = vmax.f32 %v935_v61, 0.0  ;;  %v1154_v60 = vpop.permute.xlu1 %1153 }
 0x23d   : > { %v940_v4 = vmax.f32 %v936_v63, 0.0 }
 0x23e   : > { %v941_v6 = vmax.f32 %v937_v2, 0.0 }
 0x23f   : > { %v942_v7 = vpack.c.bf16 %v940_v4, %v938_v3 }
 0x240   : > { %v943_v8 = vpack.c.bf16 %v941_v6, %v939_v5 }
 0x242   : > { %966 = vmatprep.subr.bf16.mxu1 %v943_v8 }
 0x243   : > { %967 = vmatpush1.bf16.msra.mxu1 %v942_v7 }
 0x246   : > { %1520 = vmatmul.mubr.msk.bf16.vlgmr.msra.gmra.mrb[4].mxu1 %vm824_vm1, %v1659_v9 }
 0x247   : > { %1091 = vmatprep.mubr.bf16.mxu1 %v1865_v0 }
 0x319   : > { %v1000_v11 = vpop.f32.mrb[4].mxu1 }
 0x31a   : > { %v1001_v12 = vadd.f32 %v1000_v11, %v951_v10  ;;  %v1002_v13 = vpop.f32.mrb[5].mxu1 }
 0x31b   : > { %v1003_v15 = vadd.f32 %v1002_v13, %v951_v10  ;;  %v1004_v16 = vpop.f32.mrb[6].mxu1 }
 0x31c   : > { %v1005_v17 = vadd.f32 %v1004_v16, %v956_v14  ;;  %v1006_v18 = vpop.f32.mrb[7].mxu1  ;;  %v1009_v20 = vmax.f32 %v1001_v12, 0.0 }
 0x31d   : > { %v1007_v19 = vadd.f32 %v1006_v18, %v956_v14  ;;  %v1010_v22 = vmax.f32 %v1003_v15, 0.0 }
 0x31e   : > { %v1011_v21 = vmax.f32 %v1005_v17, 0.0 }
 0x31f   : > { %v1012_v23 = vmax.f32 %v1007_v19, 0.0 }
 0x320   : > { %v1013_v24 = vpack.c.bf16 %v1011_v21, %v1009_v20 }
 0x321   : > { %v1014_v25 = vpack.c.bf16 %v1012_v23, %v1010_v22 }
 0x323   : > { %1059 = vmatprep.subr.bf16.mxu1 %v1014_v25  ;;  %1172 = vmatprep.subr.bf16.mxu0 %v1014_v25 }
 0x324   : > { %1060 = vmatpush1.bf16.msra.mxu1 %v1013_v24  ;;  %1173 = vmatpush1.bf16.msra.mxu0 %v1013_v24 }
 0x327   : > { %1523 = vmatmul.mubr.msk.bf16.vlgmr.msra.gmra.mrb[8].mxu1 %vm824_vm1, %v1660_v26  ;;  %1527 = vmatmul.mubr.msk.bf16.vlgmr.msra.gmra.mrb[8].mxu0 %vm824_vm1, %v1661_v27 }
 0x328   : > { %1101 = vmatprep.mubr.bf16.mxu1 %v1865_v0  ;;  %1214 = vmatprep.mubr.bf16.mxu0 %v1865_v0 }
 0x32f   : > { %1524 = vmatmul.mubr.msk.bf16.gmra.mrb[12].mxu1 %vm824_vm1, %v1662_v28  ;;  %1528 = vmatmul.mubr.msk.bf16.gmra.mrb[12].mxu0 %vm824_vm1, %v1663_v29 }
 0x3fa   : > { %v1093_v36 = vpop.f32.mrb[8].mxu1  ;;  %v1206_v37 = vpop.f32.mrb[8].mxu0 }
 0x3fb   : > { %v1094_v38 = vadd.f32 %v1093_v36, %v1026_v30  ;;  %v1207_v39 = vadd.f32 %v1206_v37, %v1139_v34  ;;  %v1095_v40 = vpop.f32.mrb[9].mxu1  ;;  %v1208_v0 = vpop.f32.mrb[9].mxu0 }
 0x3fc   : > { %v1096_v41 = vadd.f32 %v1095_v40, %v1026_v30  ;;  %v1209_v42 = vadd.f32 %v1208_v0, %v1139_v34  ;;  %v1097_v43 = vpop.f32.mrb[10].mxu1  ;;  %v1210_v44 = vpop.f32.mrb[10].mxu0 }
 0x3fd   : > { %v1112_v45 = vmax.f32 %v1094_v38, 0.0  ;;  %v1225_v46 = vmax.f32 %v1207_v39, 0.0  ;;  %v1098_v47 = vadd.f32 %v1097_v43, %v1031_v31  ;;  %v1211_v48 = vadd.f32 %v1210_v44, %v1144_v35  ;;  %v1099_v49 = vpop.f32.mrb[11].mxu1  ;;  %v1212_v50 = vpop.f32.mrb[11].mxu0 }
 0x3fe   : > { %v1113_v51 = vmax.f32 %v1096_v41, 0.0  ;;  %v1226_v52 = vmax.f32 %v1209_v42, 0.0  ;;  %v1100_v53 = vadd.f32 %v1099_v49, %v1031_v31  ;;  %v1213_v54 = vadd.f32 %v1212_v50, %v1144_v35 }
 0x3ff   : > { %1120 = vst [vmem:[%s2241_s22] sm:$0xff] %v1112_v45  ;;  %1233 = vst [vmem:[%s2244_s25] sm:$0xff] %v1225_v46  ;;  %v1114_v55 = vmax.f32 %v1098_v47, 0.0  ;;  %v1227_v56 = vmax.f32 %v1211_v48, 0.0 }
 0x400   : > { %1121 = vst [vmem:[%s2241_s22 + $0x8] sm:$0xff] %v1113_v51  ;;  %1234 = vst [vmem:[%s2244_s25 + $0x8] sm:$0xff] %v1226_v52  ;;  %v1115_v57 = vmax.f32 %v1100_v53, 0.0  ;;  %v1228_v58 = vmax.f32 %v1213_v54, 0.0 }
 0x401   : > { %1122 = vst [vmem:[%s2241_s22 + $0x10] sm:$0xff] %v1114_v55  ;;  %1235 = vst [vmem:[%s2244_s25 + $0x10] sm:$0xff] %v1227_v56 }
 0x402   : > { %1123 = vst [vmem:[%s2241_s22 + $0x18] sm:$0xff] %v1115_v57  ;;  %1236 = vst [vmem:[%s2244_s25 + $0x18] sm:$0xff] %v1228_v58  ;;  %v1103_v61 = vpop.f32.mrb[12].mxu1  ;;  %v1216_v62 = vpop.f32.mrb[12].mxu0 }
 0x403   : > { %v1104_v63 = vadd.f32 %v1103_v61, %v1036_v32  ;;  %v1217_v1 = vadd.f32 %v1216_v62, %v1149_v59  ;;  %v1105_v2 = vpop.f32.mrb[13].mxu1  ;;  %v1218_v3 = vpop.f32.mrb[13].mxu0 }
 0x404   : > { %v1106_v4 = vadd.f32 %v1105_v2, %v1036_v32  ;;  %v1219_v5 = vadd.f32 %v1218_v3, %v1149_v59  ;;  %v1107_v6 = vpop.f32.mrb[14].mxu1  ;;  %v1220_v7 = vpop.f32.mrb[14].mxu0 }
 0x405   : > { %v1116_v8 = vmax.f32 %v1104_v63, 0.0  ;;  %v1229_v9 = vmax.f32 %v1217_v1, 0.0  ;;  %v1108_v10 = vadd.f32 %v1107_v6, %v2236_v33  ;;  %v1221_v11 = vadd.f32 %v1220_v7, %v1154_v60  ;;  %v1109_v12 = vpop.f32.mrb[15].mxu1  ;;  %v1222_v13 = vpop.f32.mrb[15].mxu0 }
 0x406   : > { %v1117_v14 = vmax.f32 %v1106_v4, 0.0  ;;  %v1230_v15 = vmax.f32 %v1219_v5, 0.0  ;;  %v1110_v16 = vadd.f32 %v1109_v12, %v2236_v33  ;;  %v1223_v17 = vadd.f32 %v1222_v13, %v1154_v60 }
 0x407   : > { %1124 = vst [vmem:[%s2241_s22 + $0x20] sm:$0xff] %v1116_v8  ;;  %1237 = vst [vmem:[%s2244_s25 + $0x20] sm:$0xff] %v1229_v9  ;;  %v1118_v18 = vmax.f32 %v1108_v10, 0.0  ;;  %v1231_v19 = vmax.f32 %v1221_v11, 0.0 }
 0x408   : > { %1125 = vst [vmem:[%s2241_s22 + $0x28] sm:$0xff] %v1117_v14  ;;  %1238 = vst [vmem:[%s2244_s25 + $0x28] sm:$0xff] %v1230_v15  ;;  %v1119_v20 = vmax.f32 %v1110_v16, 0.0  ;;  %v1232_v21 = vmax.f32 %v1223_v17, 0.0 }
 0x409   : > { %1126 = vst [vmem:[%s2241_s22 + $0x30] sm:$0xff] %v1118_v18  ;;  %1239 = vst [vmem:[%s2244_s25 + $0x30] sm:$0xff] %v1231_v19 }
 0x40a   : > { %1127 = vst [vmem:[%s2241_s22 + $0x38] sm:$0xff] %v1119_v20  ;;  %1240 = vst [vmem:[%s2244_s25 + $0x38] sm:$0xff] %v1232_v21 }
 0x40b   : > { %1737 = shalt.err (!%p1734_p5)
}
 0x40c   : > { %s1738_s22 = scalar_lea.hbm %s2269_s27, 1024  ;;  %s1742_s26 = scalar_lea.hbm %s2425_s23, 8192 }
 0x40d   : > { %p1739_p11 = scmp.ne.s32.totalorder %s2269_s27, %s1738_s22  ;;  %p1743_p6 = scmp.lt.u32.totalorder %s2269_s27, %s2425_s23 }
 0x40e   : > { %p1744_p8 = scmp.lt.u32.totalorder %s1742_s26, %s1738_s22  ;;  %p1746_p3 = scmp.lt.u32.totalorder %s1738_s22, %s2269_s27 }
 0x40f   : > { %p1740_p2 = pnand %p1739_p11, %p2427_p1 }
 0x410   : > { %p1745_p0 = por %p1744_p8, %p1743_p6 }
 0x411   : > { %p1741_p4 = pneg %p1740_p2 }
 0x412   : > { %p1747_p13 = por %p1746_p3, %p1745_p0 }
 0x414   : > { %p1748_p7 = pnand %p1747_p13, %p1741_p4 }
 0x416   : > { %1751 = shalt.err (!%p1748_p7)
}
 0x417   : > { %s1867_s28 = smov 256   ;;  %s1868_s21 = smov 1024  }
 0x418   : > { %s1869_s17 = smov 16   ;;  %s1247_s18 = scalar_lea.sflag [#allocation9], %s2133_s14 }
 0x419   : > { %1551 = dma.vmem_to_hbm [thread:$0]  (%p2427_p1), %s2258_s24, 1024, %s2269_s27, %s1242_s19, %s1867_s28, %s1868_s21, %s1869_s17  }
 0x41a   : > { %s1752_s22 = scalar_lea.vmem %s2261_s5, 1024  ;;  %s1870_s25 = smov [#allocation8]  }
 0x41b   : > { %p1753_p10 = scmp.ne.s32.totalorder %s2261_s5, %s1752_s22  ;;  %s1756_s13 = sshll.u32 %s1870_s25, 4  ;;  %s1757_s13 = int_to_ptr.vmem [resolvable:$false] %s1756_s13 }
 0x41c   : > { %s1758_s26 = scalar_lea.vmem %s1757_s13, 2048  ;;  %p1759_p5 = scmp.lt.s32.totalorder %s2261_s5, %s1757_s13 }
 0x41d   : > { %p1754_p9 = pnand %p1753_p10, %p2427_p1  ;;  %p1760_p11 = scmp.lt.s32.totalorder %s1758_s26, %s1752_s22 }
 0x41f   : > { %p1755_p12 = pneg %p1754_p9  ;;  %p1761_p2 = por %p1760_p11, %p1759_p5 }
 0x421   : > { %p1762_p4 = pnand %p1761_p2, %p1755_p12 }
 0x423   : > { %1765 = shalt.err (!%p1762_p4)
}
 0x424   : > { %s1766_s24 = scalar_lea.hbm %s2278_s4, 1024  ;;  %s1770_s16 = scalar_lea.hbm %s2426_s0, 8192 }
 0x425   : > { %p1767_p6 = scmp.ne.s32.totalorder %s2278_s4, %s1766_s24  ;;  %p1771_p3 = scmp.lt.u32.totalorder %s2278_s4, %s2426_s0 }
 0x426   : > { %p1772_p13 = scmp.lt.u32.totalorder %s1770_s16, %s1766_s24  ;;  %p1774_p10 = scmp.lt.u32.totalorder %s1766_s24, %s2278_s4 }
 0x427   : > { %p1768_p8 = pnand %p1767_p6, %p2427_p1 }
 0x428   : > { %p1773_p7 = por %p1772_p13, %p1771_p3 }
 0x429   : > { %p1769_p0 = pneg %p1768_p8 }
 0x42a   : > { %p1775_p9 = por %p1774_p10, %p1773_p7 }
 0x42c   : > { %p1776_p12 = pnand %p1775_p9, %p1769_p0 }
 0x42e   : > { %1779 = shalt.err (!%p1776_p12)
}
 0x42f   : > { %1552 = dma.vmem_to_hbm [thread:$0]  (%p2427_p1), %s2261_s5, 1024, %s2278_s4, %s1247_s18, %s1867_s28, %s1868_s21, %s1869_s17  }
 0x430 PF: > { %s2428_s22 = sld [smem:[#allocation14_spill]]  ;;  %s2429_s13 = sld [smem:[#allocation22_spill]] }
 0x431   : > { %p1570_p5 = scmp.ge.s32.totalorder %s1858_s20, 2 }
 0x436   : > { %s1295_s26 = sand.u32 1, %s2428_s22   ;;  %p2430_p11 = scmp.ne.s32.totalorder %s2429_s13, 0 }
 0x437   : > { %s1296_s24 = scalar_lea.sflag [#allocation4], %s1295_s26 }
 0x438   : > { %p1563_p2 = pnand %p1570_p5, %p2430_p11 }
 0x43a   : > { %1821 = dma.done.wait (!%p1563_p2), %s1296_s24, 1024  }
 0x43b   : > { %1823 = vsyncadd (!%p1563_p2), %s1296_s24, 4294966272  ;;  %s1305_s15 = scalar_lea.sflag [#allocation9], %s1295_s26 }
 0x43c   : > { %1825 = dma.done.wait (!%p1563_p2), %s1305_s15, 1024  }
 0x43d   : > { %1827 = vsyncadd (!%p1563_p2), %s1305_s15, 4294966272  ;;  %s37_s20 = sadd.s32 1, %s1858_s20   ;;  %s2431_s14 = sld [smem:[#allocation15_spill]] }
 0x43e   : > { %p34_p4 = scmp.ge.s32.totalorder %s37_s20, 10   ;;  %s2432_s15 = sld [smem:[#allocation23_spill]] }
 0x43f   : > { %s2433_s16 = sld [smem:[#allocation17_spill]]  ;;  %s2434_s17 = sld [smem:[#allocation18_spill]] }
 0x440   : > { %s2435_s18 = sld [smem:[#allocation19_spill]]  ;;  %s2436_s19 = sld [smem:[#allocation20_spill]] }
 0x441   : > { %s2437_s29 = smov %s1834_s30  ;;  %36 = sbr.rel (!%p34_p4) target bundleno = 17 (0x11), region = 159 }
 0x443   : > { %s2438_s30 = smov %s2431_s14 }
 0x448   :  { %1310 = vsyncpa [#allocation3], 1 }
 0x449   :  { %1312 = vsyncpa [#allocation3 + $0x1], 1 }
 0x44a   :  { %1313 = vsyncpa [#allocation6], 1 }
 0x44b   :  { %1315 = vsyncpa [#allocation6 + $0x1], 1 }
 0x44c   :  { %1316 = vsyncpa [#allocation4], 1 }
 0x44d   :  { %1318 = vsyncpa [#allocation4 + $0x1], 1 }
 0x44e   :  { %1319 = vsyncpa [#allocation9], 1 }
 0x44f   :  { %1321 = vsyncpa [#allocation9 + $0x1], 1 }

</bundles_post_ra>
